<compile_context>
chip_gen: v6e
topology: v6e:2x2x1
jax: 0.10.0
libtpu: 0.0.40
codegen_flags: <defaults>
</compile_context>

<pallas_src>
import jax
import jax.numpy as jnp
from jax.experimental import pallas as pl
from jax.experimental.pallas import tpu as pltpu


def koopman_kernel(x_ref, wt_ref, b_ref, u_ref, o_ref):
    # x_ref:  [TB, NX]  latent-state tile
    # wt_ref: [NX, NX]  K.weight already transposed to [in_features, out_features]
    # b_ref:  [1,  NX]  K.bias
    # u_ref:  [TB, NX]  latent control tile
    # o_ref:  [TB, NX]  output tile (aliases u's HBM buffer)
    kx = jnp.dot(x_ref[...], wt_ref[...], preferred_element_type=jnp.float32)
    # Keep the elementwise epilogue in f32 registers; cast only at the store.
    acc = kx + b_ref[...].astype(jnp.float32) + u_ref[...].astype(jnp.float32)
    o_ref[...] = acc.astype(o_ref.dtype)


def _round_up(x, m):
    return ((x + m - 1) // m) * m


def koopman_control(x, u, weight, bias, *, block_b=None, weight_dtype=None):
    """out = x @ weight.T + bias + u   (PyTorch nn.Linear semantics).

    x:      [B, NX]
    u:      [B, NX]    NOTE: clobbered when the caller donates it (recommended:
                       jax.jit(koopman_control, donate_argnums=1)).
    weight: [NX, NX]   (PyTorch convention: [out_features, in_features])
    bias:   [NX]
    weight_dtype: optional narrower dtype (e.g. jnp.bfloat16) for the matmul
                  operands (both W and x); accumulation / epilogue stay f32.
    """
    B, NX = x.shape
    assert u.shape == (B, NX)
    assert weight.shape == (NX, NX)
    assert bias.shape == (NX,)

    if weight_dtype is not None:
        # Cast BOTH matmul operands so v6e/v7x take the single-pass bf16 MXU
        # path (mixed f32 x bf16 would force conversion + multi-pass f32 MXU).
        weight = weight.astype(weight_dtype)
        x = x.astype(weight_dtype)

    # One [NX,NX] transpose per pallas_call (amortized over all grid steps):
    # guarantees the kernel's dot needs no per-step weight transpose.
    w_t = weight.T
    b2 = bias.reshape(1, NX)  # keep 2-D for TPU layout

    # Batch tile: large tiles (few grid steps) to amortize the ~0.35 us
    # per-step overhead, but keep >= 2 grid steps when possible so the
    # "parallel" batch axis can shard across v7x's two TensorCores.
    if block_b is None:
        if B <= 8:
            block_b = B
        else:
            block_b = min(512, _round_up(pl.cdiv(B, 2), 8))
    grid = (pl.cdiv(B, block_b),)

    # Scoped VMEM: double-buffered x/u/out tiles + double-buffered W + bias,
    # with 2x headroom, capped safely below v7x's 64 MiB physical VMEM.
    act_itemsize = jnp.dtype(x.dtype).itemsize
    u_itemsize = jnp.dtype(u.dtype).itemsize
    w_itemsize = jnp.dtype(w_t.dtype).itemsize
    vmem_bytes = 2 * (
        block_b * NX * (act_itemsize + 2 * u_itemsize)  # x + (u, out)
        + NX * NX * w_itemsize
        + NX * u_itemsize
    )
    vmem_limit = int(min(48 * 1024 * 1024, max(4 * 1024 * 1024, 2 * vmem_bytes)))

    cost = pl.CostEstimate(
        flops=2 * B * NX * NX,
        transcendentals=0,
        bytes_accessed=(
            B * NX * (act_itemsize + 2 * u_itemsize)  # read x, u; write out
            + NX * NX * w_itemsize
            + NX * u_itemsize
        ),
    )

    return pl.pallas_call(
        koopman_kernel,
        out_shape=jax.ShapeDtypeStruct((B, NX), u.dtype),
        grid_spec=pltpu.PrefetchScalarGridSpec(
            num_scalar_prefetch=0,
            grid=grid,
            in_specs=[
                pl.BlockSpec((block_b, NX), lambda i: (i, 0)),  # x tile
                pl.BlockSpec((NX, NX), lambda i: (0, 0)),       # W^T (resident)
                pl.BlockSpec((1, NX), lambda i: (0, 0)),        # bias (resident)
                pl.BlockSpec((block_b, NX), lambda i: (i, 0)),  # u tile
            ],
            out_specs=pl.BlockSpec((block_b, NX), lambda i: (i, 0)),
        ),
        compiler_params=pltpu.CompilerParams(
            dimension_semantics=("parallel",),
            vmem_limit_bytes=vmem_limit,
        ),
        cost_estimate=cost,
        # Accumulate into u's HBM buffer; requires donation at the jit
        # boundary to avoid a defensive copy.
        input_output_aliases={3: 0},
    )(x, w_t, b2, u)


if __name__ == "__main__":
    key = jax.random.PRNGKey(0)
    kx, ku, kw, kb, kx2, ku2 = jax.random.split(key, 6)

    # Donate u so input_output_aliases={3: 0} actually aliases (u is invalid
    # after each call; all references are computed beforehand).
    fn = jax.jit(koopman_control, donate_argnums=1)

    # --- Test 1: lane-dense NX=128, batch that gives a 2-step parallel grid.
    B, NX = 256, 128
    x = jax.random.normal(kx, (B, NX), dtype=jnp.float32)
    u = jax.random.normal(ku, (B, NX), dtype=jnp.float32)
    weight = jax.random.normal(kw, (NX, NX), dtype=jnp.float32) * (1.0 / jnp.sqrt(NX))
    bias = jax.random.normal(kb, (NX,), dtype=jnp.float32) * 0.01

    ref = x @ weight.T + bias + u           # plain-JAX reference (K(x) + u)
    out = jax.block_until_ready(fn(x, u, weight, bias))

    assert out.shape == (B, NX)
    assert out.dtype == jnp.float32
    assert jnp.allclose(out, ref, atol=1e-5, rtol=1e-5)

    # --- Test 2: batch not divisible by the tile -> exercises the partial
    # (masked) tail tile of the aliased output.
    B2 = 200
    x2 = jax.random.normal(kx2, (B2, NX), dtype=jnp.float32)
    u2 = jax.random.normal(ku2, (B2, NX), dtype=jnp.float32)
    ref2 = x2 @ weight.T + bias + u2
    out2 = jax.block_until_ready(fn(x2, u2, weight, bias))

    assert out2.shape == (B2, NX)
    assert jnp.allclose(out2, ref2, atol=1e-5, rtol=1e-5)

    print("KERNEL_OK")
</pallas_src>

<mosaic_0001>
module attributes {stable_mosaic.version = 11 : i64} {
  func.func @koopman_kernel(%arg0: i32, %arg1: memref<128x128xf32, #tpu.memory_space<vmem>>, %arg2: memref<128x128xf32, #tpu.memory_space<vmem>>, %arg3: memref<1x128xf32, #tpu.memory_space<vmem>>, %arg4: memref<128x128xf32, #tpu.memory_space<vmem>>, %arg5: memref<128x128xf32, #tpu.memory_space<vmem>>) attributes {dimension_semantics = [#tpu.dimension_semantics<parallel>], iteration_bounds = array<i64: 2>, scalar_prefetch = 0 : i64, scratch_operands = 0 : i64, tpu.core_type = #tpu.core_type<tc>, window_params = [{transform_indices = @transform_0, window_bounds = array<i64: 128, 128>}, {pipeline_mode = #tpu.pipeline_mode<synchronous>, transform_indices = @transform_1, window_bounds = array<i64: 128, 128>}, {pipeline_mode = #tpu.pipeline_mode<synchronous>, transform_indices = @transform_2, window_bounds = array<i64: 1, 128>}, {transform_indices = @transform_3, window_bounds = array<i64: 128, 128>}, {transform_indices = @transform_4, window_bounds = array<i64: 128, 128>}]} {
    %c0 = arith.constant 0 : index
    %c0_0 = arith.constant 0 : index
    %0 = vector.load %arg1[%c0, %c0_0] : memref<128x128xf32, #tpu.memory_space<vmem>>, vector<128x128xf32>
    %c0_1 = arith.constant 0 : index
    %c0_2 = arith.constant 0 : index
    %1 = vector.load %arg2[%c0_1, %c0_2] : memref<128x128xf32, #tpu.memory_space<vmem>>, vector<128x128xf32>
    %cst = arith.constant dense<0.000000e+00> : vector<128x128xf32>
    %2 = tpu.matmul %0, %1, %cst {dimension_numbers = #tpu.dot_dimension_numbers<[1], [0], [0], [1], [0, 0, 1, 1], [], []>} : vector<128x128xf32>, vector<128x128xf32>, vector<128x128xf32> -> vector<128x128xf32>
    %c0_3 = arith.constant 0 : index
    %c0_4 = arith.constant 0 : index
    %3 = vector.load %arg3[%c0_3, %c0_4] : memref<1x128xf32, #tpu.memory_space<vmem>>, vector<1x128xf32>
    %4 = vector.broadcast %3 : vector<1x128xf32> to vector<128x128xf32>
    %5 = arith.addf %2, %4 : vector<128x128xf32>
    %c0_5 = arith.constant 0 : index
    %c0_6 = arith.constant 0 : index
    %6 = vector.load %arg4[%c0_5, %c0_6] : memref<128x128xf32, #tpu.memory_space<vmem>>, vector<128x128xf32>
    %7 = arith.addf %5, %6 : vector<128x128xf32>
    %c0_7 = arith.constant 0 : index
    %c0_8 = arith.constant 0 : index
    %8 = vector.load %arg5[%c0_7, %c0_8] : memref<128x128xf32, #tpu.memory_space<vmem>>, vector<128x128xf32>
    tpu.vector_store %arg5[%c0_7, %c0_8], %7 {strides = array<i32>} : memref<128x128xf32, #tpu.memory_space<vmem>>, vector<128x128xf32>,
    return
  }
  func.func @transform_0(%arg0: i32) -> (i32, i32) {
    %c0_i32 = arith.constant 0 : i32
    %c0_i32_0 = arith.constant 0 : i32
    return %arg0, %c0_i32 : i32, i32
  }
  func.func @transform_1(%arg0: i32) -> (i32, i32) {
    %c0_i32 = arith.constant 0 : i32
    %c0_i32_0 = arith.constant 0 : i32
    %c0_i32_1 = arith.constant 0 : i32
    return %c0_i32, %c0_i32_0 : i32, i32
  }
  func.func @transform_2(%arg0: i32) -> (i32, i32) {
    %c0_i32 = arith.constant 0 : i32
    %c0_i32_0 = arith.constant 0 : i32
    %c0_i32_1 = arith.constant 0 : i32
    return %c0_i32, %c0_i32_0 : i32, i32
  }
  func.func @transform_3(%arg0: i32) -> (i32, i32) {
    %c0_i32 = arith.constant 0 : i32
    %c0_i32_0 = arith.constant 0 : i32
    return %arg0, %c0_i32 : i32, i32
  }
  func.func @transform_4(%arg0: i32) -> (i32, i32) {
    %c0_i32 = arith.constant 0 : i32
    %c0_i32_0 = arith.constant 0 : i32
    return %arg0, %c0_i32 : i32, i32
  }
}

</mosaic_0001>

<bundles_post_ra>
// kernel: koopman_control.1
= control target key start
LH: loop header
LB: loop body
LE: loop exit
PB: predicated region body
PF: predicated region fallthrough
CT: control target
= control target key end

     0   :  { %9 = vsyncpa [#allocation3], 0  ;;  %s1171_s0 = inlined_call_operand.vmem [shape: f32[256,128], index: 0, kind: input, shape index: {}]   ;;  %s1172_s1 = inlined_call_operand.vmem [shape: f32[128,128], index: 1, kind: input, shape index: {}]   ;;  %s1173_s2 = inlined_call_operand.vmem [shape: f32[1,128], index: 2, kind: input, shape index: {}]   ;;  %s1174_s3 = inlined_call_operand.hbm [shape: f32[256,128], index: 3, kind: input, shape index: {}, may-alias: {3,4}]   ;;  %s1175_s4 = inlined_call_operand.hbm [shape: f32[256,128], index: 4, kind: output, shape index: {}, may-alias: {3,4}]  }
   0x1   :  { %11 = vsyncpa [#allocation3 + $0x1], 0 }
   0x2   :  { %12 = vsyncpa [#allocation4], 0 }
   0x3   :  { %14 = vsyncpa [#allocation4 + $0x1], 0  ;;  %s885_s15 = smov 0   ;;  %s887_s16 = smov 0  }
   0x4   :  { %s889_s17 = smov 0   ;;  %s891_s18 = smov 0  }
   0x5 LB: > { %s906_s19 = sadd.s32 4294967295, %s852_s18   ;;  %s571_s20 = sadd.s32 4294967294, %s852_s18   ;;  %s852_s18 = sphi %s891_s18, %s1190_s18   ;;  %s848_s17 = sphi %s889_s17, %s1189_s17   ;;  %s844_s16 = sphi %s887_s16, %s1188_s16   ;;  %s840_s15 = sphi %s885_s15, %s1187_s15  }
   0x6   : > { %s910_s21 = sadd.s32 1, %s852_s18   ;;  %s95_s22 = sadd.s32 1, %s848_s17 }
   0x7   : > { %s92_s23 = ssub.s32 %s852_s18, %s910_s21  ;;  %p102_p0 = scmp.ne.s32.totalorder %s848_s17, %s844_s16 }
   0x8   : > { %p93_p1 = scmp.eq.s32.totalorder %s92_s23, 0  ;;  %p103_p2 = scmp.eq.s32.totalorder %s852_s18, 0 }
   0x9   : > { %p108_p3 = scmp.ne.s32.totalorder %s844_s16, %s840_s15  ;;  %p109_p4 = scmp.eq.s32.totalorder %s906_s19, 0 }
   0xa   : > { %s922_s24 = scalar_select %p93_p1, %s848_s17, %s95_s22  }
   0xb   : > { %p924_p5 = por %p103_p2, %p102_p0  ;;  %p928_p6 = por %p109_p4, %p108_p3 }
   0xc   : > { %p132_p7 = scmp.eq.s32.totalorder %s906_s19, 1  ;;  %p138_p8 = scmp.eq.s32.totalorder %s571_s20, 1 }
   0xd   : > { %s1179_s26 = scalar_select %p928_p6, 1, 0 }
   0xe   : > { %p722_p10 = scmp.lt.s32.totalorder %s852_s18, 2  ;;  %p935_p11 = por %p132_p7, %p102_p0 }
   0xf   : > { %p939_p12 = por %p138_p8, %p108_p3  ;;  %s173_s29 = sand.u32 1, %s848_s17  }
  0x10   : > { %s1180_s27 = scalar_select %p935_p11, 1, 0 }
  0x11   : > { %s1181_s28 = scalar_select %p939_p12, 1, 0 }
  0x12   : > { %s588_s30 = sshll.u32 %s852_s18, 11  ;;  %s574_s5 = sshll.u32 %s173_s29, 7 }
  0x13   : > { %s948_s8 = scalar_lea.hbm %s1174_s3, %s588_s30  ;;  %s177_s9 = scalar_lea.vmem [#allocation2], %s574_s5 }
  0x14   : > { %s184_s10 = sshll.u32 %s177_s9, 4  ;;  %p952_p13 = pnand %p722_p10, %p924_p5  ;;  %s956_s10 = int_to_ptr.vmem [resolvable:$true] %s184_s10 }
  0x15   : > { %s958_s12 = scalar_lea.sflag [#allocation3], %s173_s29  ;;  %s760_s13 = scalar_lea.hbm %s948_s8, 2048 }
  0x16   : > { %p761_p0 = scmp.ne.s32.totalorder %s948_s8, %s760_s13  ;;  %p762_p1 = pneg %p952_p13 }
  0x17   : > { %s765_s22 = scalar_lea.hbm %s1174_s3, 4096  ;;  %p766_p4 = scmp.lt.s32.totalorder %s948_s8, %s1174_s3 }
  0x18   : > { %p763_p2 = pnand %p762_p1, %p761_p0  ;;  %p767_p5 = scmp.lt.s32.totalorder %s765_s22, %s760_s13 }
  0x1a   : > { %p764_p3 = pneg %p763_p2  ;;  %p768_p7 = por %p767_p5, %p766_p4 }
  0x1c   : > { %p769_p8 = pnand %p768_p7, %p764_p3 }
  0x1e   : > { %772 = shalt.err (!%p769_p8)
}
  0x1f   : > { %s773_s29 = scalar_lea.vmem %s956_s10, 2048  ;;  %s854_s30 = smov [#allocation2]  }
  0x20   : > { %p774_p10 = scmp.ne.s32.totalorder %s956_s10, %s773_s29  ;;  %s778_s5 = sshll.u32 %s854_s30, 4  ;;  %s779_s5 = int_to_ptr.vmem [resolvable:$false] %s778_s5 }
  0x21   : > { %s780_s6 = scalar_lea.vmem %s779_s5, 4096  ;;  %p781_p2 = scmp.lt.s32.totalorder %s956_s10, %s779_s5 }
  0x22   : > { %p776_p9 = pnand %p774_p10, %p762_p1  ;;  %p782_p12 = scmp.lt.s32.totalorder %s780_s6, %s773_s29 }
  0x24   : > { %p777_p0 = pneg %p776_p9  ;;  %p783_p11 = por %p782_p12, %p781_p2 }
  0x26   : > { %p784_p6 = pnand %p783_p11, %p777_p0 }
  0x28   : > { %787 = shalt.err (!%p784_p6)
}
  0x29   : > { %s855_s7 = smov 128   ;;  %s856_s9 = smov 8  }
  0x2a   : > { %717 = dma.hbm_to_vmem [thread:$0]  (!%p952_p13), %s948_s8, 2048, %s956_s10, %s958_s12, %s855_s7, %s855_s7, %s856_s9  }
  0x2b   : > { %p577_p9 = scmp.ge.s32.totalorder %s852_s18, 1  ;;  %p192_p1 = scmp.lt.s32.totalorder %s852_s18, 3 }
  0x2d   : > { %p193_p3 = pnand %p577_p9, %p192_p1 }
  0x2e   : > { %s982_s13 = sand.u32 (!%p193_p3), 1, %s844_s16   ;;  %p1183_p6 = scmp.ne.s32.totalorder (!%p193_p3), %s1179_s26, 0 }
  0x2f   : > { %196 = sbr.rel (%p193_p3) target bundleno = 312 (0x138), region = 36  ;;  %s578_s14 = sshll.u32 (!%p193_p3), %s982_s13, 7 }
  0x30   : > { %s199_s20 = scalar_lea.sflag (!%p193_p3), [#allocation3], %s982_s13  ;;  %s988_s22 = scalar_lea.vmem (!%p193_p3), [#allocation2], %s578_s14 }
  0x34   : > { %831 = dma.done.wait (%p1183_p6), %s199_s20, 2048  }
  0x35   : > { %833 = vsyncadd (%p1183_p6), %s199_s20, 4294965248  ;;  %v271_v0 = vld [vmem:[%s1172_s1 + $0x78] sm:$0xff]  ;;  %v270_v1 = vld [vmem:[%s1172_s1 + $0x70] sm:$0xff]  ;;  %s580_s11 = sshll.u32 %s906_s19, 4  ;;  %s1081_s7 = scalar_lea.vmem [#allocation5], %s578_s14 }
  0x36   : > { %622 = vmatprep.subr.mxu0 %v271_v0  ;;  %678 = vmatprep.subr.mxu1 %v271_v0  ;;  %v269_v2 = vld [vmem:[%s1172_s1 + $0x68] sm:$0xff]  ;;  %v268_v3 = vld [vmem:[%s1172_s1 + $0x60] sm:$0xff]  ;;  %v267_v4 = vld [vmem:[%s1172_s1 + $0x58] sm:$0xff]  ;;  %p233_p11 = scmp.lt.s32.totalorder %s580_s11, 31  ;;  %s589_s14 = sshll.u32 %s906_s19, 11 }
  0x37   : > { %623 = vmatpush3.msra.mxu0 %v271_v0  ;;  %694 = vmatpush3.msra.mxu1 %v271_v0  ;;  %v266_v5 = vld [vmem:[%s1172_s1 + $0x50] sm:$0xff]  ;;  %v265_v6 = vld [vmem:[%s1172_s1 + $0x48] sm:$0xff]  ;;  %v264_v7 = vld [vmem:[%s1172_s1 + $0x40] sm:$0xff]  ;;  %s486_s9 = sshll.u32 %s1081_s7, 4  ;;  %s1122_s19 = scalar_lea.hbm %s1175_s4, %s589_s14  ;;  %s1124_s9 = int_to_ptr.vmem [resolvable:$true] %s486_s9 }
  0x38   : > { %624 = vmatprep.subr.mxu0 %v270_v1  ;;  %679 = vmatprep.subr.mxu1 %v270_v1  ;;  %v263_v8 = vld [vmem:[%s1172_s1 + $0x38] sm:$0xff]  ;;  %v262_v9 = vld [vmem:[%s1172_s1 + $0x30] sm:$0xff]  ;;  %v261_v10 = vld [vmem:[%s1172_s1 + $0x28] sm:$0xff]  ;;  %s1192_s11 = smov (!%p233_p11, %s580_s11), 31  ;;  %p1184_p13 = scmp.ne.s32.totalorder %s1180_s27, 0 }
  0x39   : > { %625 = vmatpush3.msra.mxu0 %v270_v1  ;;  %695 = vmatpush3.msra.mxu1 %v270_v1  ;;  %v260_v11 = vld [vmem:[%s1172_s1 + $0x20] sm:$0xff]  ;;  %v259_v12 = vld [vmem:[%s1172_s1 + $0x18] sm:$0xff]  ;;  %v258_v13 = vld [vmem:[%s1172_s1 + $0x10] sm:$0xff]  ;;  %s581_s10 = sshll.u32 %s1192_s11, 3  ;;  %s857_s12 = smov [#allocation5]  }
  0x3a   : > { %626 = vmatprep.subr.mxu0 %v269_v2  ;;  %680 = vmatprep.subr.mxu1 %v269_v2  ;;  %v257_v14 = vld [vmem:[%s1172_s1 + $0x8] sm:$0xff]  ;;  %s1043_s29 = scalar_lea.vmem %s1171_s0, %s581_s10  ;;  %v256_v15 = vld [vmem:[%s1172_s1] sm:$0xff]  ;;  %v427_v48 = vld [vmem:[%s988_s22 + $0x18] sm:$0xff]  ;;  %s788_s10 = scalar_lea.vmem %s1124_s9, 2048 }
  0x3b   : > { %627 = vmatpush3.msra.mxu0 %v269_v2  ;;  %696 = vmatpush3.msra.mxu1 %v269_v2  ;;  %v240_v16 = vld [vmem:[%s1043_s29] sm:$0xff]  ;;  %v241_v18 = vld [vmem:[%s1043_s29 + $0x8] sm:$0xff]  ;;  %v242_v20 = vld [vmem:[%s1043_s29 + $0x10] sm:$0xff]  ;;  %p789_p12 = scmp.ne.s32.totalorder %s1124_s9, %s788_s10  ;;  %s792_s23 = sshll.u32 %s857_s12, 4  ;;  %s793_s23 = int_to_ptr.vmem [resolvable:$false] %s792_s23 }
  0x3c   : > { %628 = vmatprep.subr.mxu0 %v268_v3  ;;  %681 = vmatprep.subr.mxu1 %v268_v3  ;;  %v248_v17 = vld [vmem:[%s1043_s29 + $0x40] sm:$0xff]  ;;  %v249_v19 = vld [vmem:[%s1043_s29 + $0x48] sm:$0xff]  ;;  %v250_v21 = vld [vmem:[%s1043_s29 + $0x50] sm:$0xff]  ;;  %s794_s25 = scalar_lea.vmem %s793_s23, 4096  ;;  %p795_p7 = scmp.lt.s32.totalorder %s1124_s9, %s793_s23 }
  0x3d   : > { %629 = vmatpush3.msra.mxu0 %v268_v3  ;;  %697 = vmatpush3.msra.mxu1 %v268_v3  ;;  %v243_v22 = vld [vmem:[%s1043_s29 + $0x18] sm:$0xff]  ;;  %v244_v24 = vld [vmem:[%s1043_s29 + $0x20] sm:$0xff]  ;;  %v245_v26 = vld [vmem:[%s1043_s29 + $0x28] sm:$0xff]  ;;  %p790_p4 = pnand %p789_p12, %p1184_p13  ;;  %p796_p8 = scmp.lt.s32.totalorder %s794_s25, %s788_s10 }
  0x3e   : > { %630 = vmatprep.subr.mxu0 %v267_v4  ;;  %682 = vmatprep.subr.mxu1 %v267_v4  ;;  %v251_v23 = vld [vmem:[%s1043_s29 + $0x58] sm:$0xff]  ;;  %v252_v25 = vld [vmem:[%s1043_s29 + $0x60] sm:$0xff]  ;;  %v253_v27 = vld [vmem:[%s1043_s29 + $0x68] sm:$0xff] }
  0x3f   : > { %631 = vmatpush3.msra.mxu0 %v267_v4  ;;  %698 = vmatpush3.msra.mxu1 %v267_v4  ;;  %v246_v28 = vld [vmem:[%s1043_s29 + $0x30] sm:$0xff]  ;;  %v247_v30 = vld [vmem:[%s1043_s29 + $0x38] sm:$0xff]  ;;  %v1067_v32 = vld [vmem:[%s1173_s2] ss:$0 sm:$0xff]  ;;  %p791_p5 = pneg %p790_p4  ;;  %p797_p10 = por %p796_p8, %p795_p7 }
  0x40   : > { %632 = vmatprep.subr.mxu0 %v266_v5  ;;  %683 = vmatprep.subr.mxu1 %v266_v5  ;;  %v254_v29 = vld [vmem:[%s1043_s29 + $0x70] sm:$0xff]  ;;  %v255_v31 = vld [vmem:[%s1043_s29 + $0x78] sm:$0xff]  ;;  %v425_v34 = vld [vmem:[%s988_s22 + $0x8] sm:$0xff] }
  0x41   : > { %633 = vmatpush3.msra.mxu0 %v266_v5  ;;  %699 = vmatpush3.msra.mxu1 %v266_v5  ;;  %v433_v36 = vld [vmem:[%s988_s22 + $0x48] sm:$0xff]  ;;  %v424_v40 = vld [vmem:[%s988_s22] sm:$0xff]  ;;  %v435_v50 = vld [vmem:[%s988_s22 + $0x58] sm:$0xff]  ;;  %p798_p0 = pnand %p797_p10, %p791_p5 }
  0x42   : > { %634 = vmatprep.subr.mxu0 %v265_v6  ;;  %684 = vmatprep.subr.mxu1 %v265_v6  ;;  %v432_v42 = vld [vmem:[%s988_s22 + $0x40] sm:$0xff]  ;;  %v426_v56 = vld [vmem:[%s988_s22 + $0x10] sm:$0xff]  ;;  %v429_v0 = vld [vmem:[%s988_s22 + $0x28] sm:$0xff] }
  0x43   : > { %635 = vmatpush3.msra.mxu0 %v265_v6  ;;  %700 = vmatpush3.msra.mxu1 %v265_v6  ;;  %v434_v58 = vld [vmem:[%s988_s22 + $0x50] sm:$0xff]  ;;  %v437_v2 = vld [vmem:[%s988_s22 + $0x68] sm:$0xff] }
  0x44   : > { %636 = vmatprep.subr.mxu0 %v264_v7  ;;  %685 = vmatprep.subr.mxu1 %v264_v7 }
  0x45   : > { %637 = vmatpush3.msra.mxu0 %v264_v7  ;;  %701 = vmatpush3.msra.mxu1 %v264_v7 }
  0x46   : > { %638 = vmatprep.subr.mxu0 %v263_v8  ;;  %686 = vmatprep.subr.mxu1 %v263_v8 }
  0x47   : > { %639 = vmatpush3.msra.mxu0 %v263_v8  ;;  %702 = vmatpush3.msra.mxu1 %v263_v8  ;;  %v428_v8 = vld [vmem:[%s988_s22 + $0x20] sm:$0xff] }
  0x48   : > { %640 = vmatprep.subr.mxu0 %v262_v9  ;;  %687 = vmatprep.subr.mxu1 %v262_v9 }
  0x49   : > { %641 = vmatpush3.msra.mxu0 %v262_v9  ;;  %703 = vmatpush3.msra.mxu1 %v262_v9 }
  0x4a   : > { %642 = vmatprep.subr.mxu0 %v261_v10  ;;  %688 = vmatprep.subr.mxu1 %v261_v10 }
  0x4b   : > { %643 = vmatpush3.msra.mxu0 %v261_v10  ;;  %704 = vmatpush3.msra.mxu1 %v261_v10  ;;  %v436_v10 = vld [vmem:[%s988_s22 + $0x60] sm:$0xff] }
  0x4c   : > { %644 = vmatprep.subr.mxu0 %v260_v11  ;;  %689 = vmatprep.subr.mxu1 %v260_v11 }
  0x4d   : > { %645 = vmatpush3.msra.mxu0 %v260_v11  ;;  %705 = vmatpush3.msra.mxu1 %v260_v11 }
  0x4e   : > { %646 = vmatprep.subr.mxu0 %v259_v12  ;;  %690 = vmatprep.subr.mxu1 %v259_v12 }
  0x4f   : > { %647 = vmatpush3.msra.mxu0 %v259_v12  ;;  %706 = vmatpush3.msra.mxu1 %v259_v12 }
  0x50   : > { %648 = vmatprep.subr.mxu0 %v258_v13  ;;  %691 = vmatprep.subr.mxu1 %v258_v13 }
  0x51   : > { %649 = vmatpush3.msra.mxu0 %v258_v13  ;;  %707 = vmatpush3.msra.mxu1 %v258_v13 }
  0x52   : > { %650 = vmatprep.subr.mxu0 %v257_v14  ;;  %692 = vmatprep.subr.mxu1 %v257_v14 }
  0x53   : > { %651 = vmatpush3.msra.mxu0 %v257_v14  ;;  %708 = vmatpush3.msra.mxu1 %v257_v14 }
  0x54   : > { %652 = vmatprep.subr.mxu0 %v256_v15  ;;  %693 = vmatprep.subr.mxu1 %v256_v15 }
  0x55   : > { %653 = vmatpush3.msra.mxu0 %v256_v15  ;;  %709 = vmatpush3.msra.mxu1 %v256_v15 }
  0x56   : > { %654 = vmatprep.mubr.f32.mxu0 %v240_v16  ;;  %666 = vmatprep.mubr.f32.mxu1 %v248_v17  ;;  %v431_v16 = vld [vmem:[%s988_s22 + $0x38] sm:$0xff] }
  0x57   : > { %655 = vmatmul.mubr.f32.vlgmr.msra.gmra.mxu0 %v241_v18  ;;  %667 = vmatmul.mubr.f32.vlgmr.msra.gmra.mxu1 %v249_v19  ;;  %v439_v18 = vld [vmem:[%s988_s22 + $0x78] sm:$0xff] }
  0x58   : > { %657 = vmatprep.mubr.f32.mxu0 %v242_v20  ;;  %669 = vmatprep.mubr.f32.mxu1 %v250_v21 }
  0x5b   : > { %658 = vmatmul.mubr.f32.gmra.mxu0 %v243_v22  ;;  %670 = vmatmul.mubr.f32.gmra.mxu1 %v251_v23 }
  0x5c   : > { %660 = vmatprep.mubr.f32.mxu0 %v244_v24  ;;  %672 = vmatprep.mubr.f32.mxu1 %v252_v25  ;;  %v430_v24 = vld [vmem:[%s988_s22 + $0x30] sm:$0xff] }
  0x5f   : > { %661 = vmatmul.mubr.f32.gmra.mxu0 %v245_v26  ;;  %673 = vmatmul.mubr.f32.gmra.mxu1 %v253_v27  ;;  %v438_v26 = vld [vmem:[%s988_s22 + $0x70] sm:$0xff]  ;;  %s473_s22 = scalar_lea.sflag [#allocation4], %s982_s13 }
  0x60   : > { %663 = vmatprep.mubr.f32.mxu0 %v246_v28  ;;  %675 = vmatprep.mubr.f32.mxu1 %v254_v29 }
  0x63   : > { %664 = vmatmul.mubr.f32.gmra.mxu0 %v247_v30  ;;  %676 = vmatmul.mubr.f32.gmra.mxu1 %v255_v31 }
 0x117   : > { %v656_v33 = vpop.f32.mrf.mxu0  ;;  %v668_v35 = vpop.f32.mrf.mxu1 }
 0x118   : > { %v351_v37 = vadd.f32 %v656_v33, %v1067_v32  ;;  %v391_v38 = vadd.f32 %v668_v35, %v1067_v32 }
 0x119   : > { %v345_v39 = vpop.f32.mrf.mxu0  ;;  %v385_v41 = vpop.f32.mrf.mxu1 }
 0x11a   : > { %v441_v43 = vadd.f32 %v425_v34, %v351_v37  ;;  %v449_v44 = vadd.f32 %v433_v36, %v391_v38  ;;  %v346_v45 = vadd.f32 %v1067_v32, %v345_v39  ;;  %v386_v46 = vadd.f32 %v1067_v32, %v385_v41 }
 0x11b   : > { %v659_v47 = vpop.f32.mrf.mxu0  ;;  %v671_v49 = vpop.f32.mrf.mxu1 }
 0x11c   : > { %457 = vst [vmem:[%s1081_s7 + $0x8] sm:$0xff] %v441_v43  ;;  %465 = vst [vmem:[%s1081_s7 + $0x48] sm:$0xff] %v449_v44  ;;  %v440_v51 = vadd.f32 %v424_v40, %v346_v45  ;;  %v448_v52 = vadd.f32 %v432_v42, %v386_v46  ;;  %v361_v53 = vadd.f32 %v659_v47, %v1067_v32 }
 0x11d   : > { %v401_v54 = vadd.f32 %v671_v49, %v1067_v32  ;;  %v355_v55 = vpop.f32.mrf.mxu0  ;;  %v395_v57 = vpop.f32.mrf.mxu1 }
 0x11e   : > { %456 = vst [vmem:[%s1081_s7] sm:$0xff] %v440_v51  ;;  %464 = vst [vmem:[%s1081_s7 + $0x40] sm:$0xff] %v448_v52  ;;  %v443_v59 = vadd.f32 %v427_v48, %v361_v53  ;;  %v356_v61 = vadd.f32 %v1067_v32, %v355_v55  ;;  %v396_v62 = vadd.f32 %v1067_v32, %v395_v57 }
 0x11f   : > { %v451_v60 = vadd.f32 %v435_v50, %v401_v54  ;;  %v662_v63 = vpop.f32.mrf.mxu0  ;;  %v674_v1 = vpop.f32.mrf.mxu1 }
 0x120   : > { %459 = vst [vmem:[%s1081_s7 + $0x18] sm:$0xff] %v443_v59  ;;  %v442_v3 = vadd.f32 %v426_v56, %v356_v61  ;;  %v450_v4 = vadd.f32 %v434_v58, %v396_v62  ;;  %v371_v5 = vadd.f32 %v662_v63, %v1067_v32  ;;  %v411_v6 = vadd.f32 %v674_v1, %v1067_v32 }
 0x121   : > { %467 = vst [vmem:[%s1081_s7 + $0x58] sm:$0xff] %v451_v60  ;;  %v365_v7 = vpop.f32.mrf.mxu0  ;;  %v405_v9 = vpop.f32.mrf.mxu1 }
 0x122   : > { %458 = vst [vmem:[%s1081_s7 + $0x10] sm:$0xff] %v442_v3  ;;  %466 = vst [vmem:[%s1081_s7 + $0x50] sm:$0xff] %v450_v4  ;;  %v445_v11 = vadd.f32 %v429_v0, %v371_v5  ;;  %v453_v12 = vadd.f32 %v437_v2, %v411_v6  ;;  %v366_v13 = vadd.f32 %v1067_v32, %v365_v7 }
 0x123   : > { %v406_v14 = vadd.f32 %v1067_v32, %v405_v9  ;;  %v665_v15 = vpop.f32.mrf.mxu0  ;;  %v677_v17 = vpop.f32.mrf.mxu1 }
 0x124   : > { %461 = vst [vmem:[%s1081_s7 + $0x28] sm:$0xff] %v445_v11  ;;  %469 = vst [vmem:[%s1081_s7 + $0x68] sm:$0xff] %v453_v12  ;;  %v444_v19 = vadd.f32 %v428_v8, %v366_v13  ;;  %v381_v21 = vadd.f32 %v665_v15, %v1067_v32  ;;  %v421_v22 = vadd.f32 %v677_v17, %v1067_v32 }
 0x125   : > { %v452_v20 = vadd.f32 %v436_v10, %v406_v14  ;;  %v375_v23 = vpop.f32.mrf.mxu0  ;;  %v415_v25 = vpop.f32.mrf.mxu1 }
 0x126   : > { %460 = vst [vmem:[%s1081_s7 + $0x20] sm:$0xff] %v444_v19  ;;  %v447_v27 = vadd.f32 %v431_v16, %v381_v21  ;;  %v455_v28 = vadd.f32 %v439_v18, %v421_v22  ;;  %v376_v29 = vadd.f32 %v1067_v32, %v375_v23  ;;  %v416_v30 = vadd.f32 %v1067_v32, %v415_v25 }
 0x127   : > { %468 = vst [vmem:[%s1081_s7 + $0x60] sm:$0xff] %v452_v20 }
 0x128   : > { %463 = vst [vmem:[%s1081_s7 + $0x38] sm:$0xff] %v447_v27  ;;  %471 = vst [vmem:[%s1081_s7 + $0x78] sm:$0xff] %v455_v28  ;;  %v446_v31 = vadd.f32 %v430_v24, %v376_v29  ;;  %v454_v33 = vadd.f32 %v438_v26, %v416_v30 }
 0x12a   : > { %462 = vst [vmem:[%s1081_s7 + $0x30] sm:$0xff] %v446_v31  ;;  %470 = vst [vmem:[%s1081_s7 + $0x70] sm:$0xff] %v454_v33 }
 0x12b   : > { %801 = shalt.err (!%p798_p0)
}
 0x12c   : > { %s802_s26 = scalar_lea.hbm %s1122_s19, 2048  ;;  %s806_s30 = scalar_lea.hbm %s1175_s4, 4096 }
 0x12d   : > { %p803_p2 = scmp.ne.s32.totalorder %s1122_s19, %s802_s26  ;;  %p807_p3 = scmp.lt.s32.totalorder %s1122_s19, %s1175_s4 }
 0x12e   : > { %p808_p6 = scmp.lt.s32.totalorder %s806_s30, %s802_s26 }
 0x12f   : > { %p804_p9 = pnand %p803_p2, %p1184_p13 }
 0x130   : > { %p809_p11 = por %p808_p6, %p807_p3 }
 0x131   : > { %p805_p1 = pneg %p804_p9 }
 0x133   : > { %p810_p12 = pnand %p809_p11, %p805_p1 }
 0x135   : > { %813 = shalt.err (!%p810_p12)
}
 0x136   : > { %s858_s7 = smov 128   ;;  %s859_s14 = smov 8  }
 0x137   : > { %712 = dma.vmem_to_hbm [thread:$0]  (%p1184_p13), %s1124_s9, 2048, %s1122_s19, %s473_s22, %s858_s7, %s858_s7, %s859_s14  }
 0x138 PF: > { %s501_s20 = sand.u32 1, %s840_s15   ;;  %p1185_p4 = scmp.ne.s32.totalorder %s1181_s28, 0 }
 0x139   : > { %p1186_p5 = scmp.ge.s32.totalorder %s852_s18, 2  ;;  %s502_s8 = scalar_lea.sflag [#allocation4], %s501_s20 }
 0x13b   : > { %p719_p7 = pnand %p1186_p5, %p1185_p4 }
 0x13d   : > { %p720_p8 = pneg %p719_p7 }
 0x13f   : > { %835 = dma.done.wait (%p720_p8), %s502_s8, 2048  }
 0x140   : > { %837 = vsyncadd (%p720_p8), %s502_s8, 4294965248  ;;  %p17_p10 = scmp.ge.s32.totalorder %s910_s21, 4   ;;  %s1187_s15 = smov %s844_s16 }
 0x141   : > { %s1188_s16 = smov %s848_s17  ;;  %s1189_s17 = smov %s922_s24 }
 0x142   : > { %s1190_s18 = smov %s910_s21  ;;  %19 = sbr.rel (!%p17_p10) target bundleno = 5 (0x5), region = 84 }
 0x147   :  { %507 = vsyncpa [#allocation3], 1 }
 0x148   :  { %509 = vsyncpa [#allocation3 + $0x1], 1 }
 0x149   :  { %510 = vsyncpa [#allocation4], 1 }
 0x14a   :  { %512 = vsyncpa [#allocation4 + $0x1], 1 }

</bundles_post_ra>
